<compile_context>
chip_gen: v7x
topology: tpu7x:2x2x1
jax: 0.10.0
libtpu: 0.0.40
codegen_flags: <defaults>
</compile_context>

<pallas_src>
import jax
import jax.numpy as jnp
from jax.experimental import pallas as pl
from jax.experimental.pallas import tpu as pltpu


def _lstm_cell_kernel(x_ref, h_ref, c_ref, wx_ref, wh_ref, b_ref, out_ref):
    """Fused LSTM cell step: one bf16 MXU pass for all four gates + f32 state update."""
    h = c_ref.shape[-1]  # hidden size (static)

    # bf16 MXU operands (cast fused into the kernel); f32 accumulation.
    x_bf = x_ref[...].astype(jnp.bfloat16)
    h_bf = h_ref[...].astype(jnp.bfloat16)
    pre = (jnp.dot(x_bf, wx_ref[...], preferred_element_type=jnp.float32)
           + jnp.dot(h_bf, wh_ref[...], preferred_element_type=jnp.float32)
           + b_ref[...])                                   # (B, 4H) f32

    # Gate packing order along the 4H axis: forget, input, _update, out.
    # Full-vreg sigmoid + full-vreg tanh + one lane select (lanes [2H,3H) = tanh).
    lane = jax.lax.broadcasted_iota(jnp.int32, pre.shape, dimension=1)
    is_update = (lane >= 2 * h) & (lane < 3 * h)
    act = jnp.where(is_update, jnp.tanh(pre), jax.nn.sigmoid(pre))

    f_t   = act[:, 0 * h:1 * h]
    i_t   = act[:, 1 * h:2 * h]
    c_opt = act[:, 2 * h:3 * h]
    o_t   = act[:, 3 * h:4 * h]

    c_t = c_ref[...] * f_t + i_t * c_opt
    h_t = o_t * jnp.tanh(c_t)

    # Single lane-dense (B, 128) output slab: [h_t | c_t | 0 | 0] -> one unmasked store.
    pad = jnp.zeros_like(pre[:, :2 * h])
    out_ref[...] = jnp.concatenate([h_t, c_t, pad], axis=-1)


def embedding_lstm_cell(x, h_prev, c_prev, embedding_vec, params):
    """JAX wrapper mirroring EmbeddingLSTMCell.forward (vanilla mode).

    params: {'wx': (input_size, 4H) bf16, 'wh': (H, 4H) bf16, 'b': (1, 4H) f32}
    embedding_vec is ignored (vanilla rearrange_inputs drops it).
    Returns (h_t, c_t), both (B, H) float32.
    """
    del embedding_vec  # ignored in vanilla mode
    B = x.shape[0]
    H = h_prev.shape[1]

    x_flat = x.reshape(B, -1)                       # contiguous NCHW flatten (free), stays f32
    h32 = h_prev.astype(jnp.float32)
    c32 = c_prev.astype(jnp.float32)

    vmem_spec = lambda: pl.BlockSpec(memory_space=pltpu.MemorySpace.VMEM)

    out = pl.pallas_call(
        _lstm_cell_kernel,
        in_specs=[vmem_spec() for _ in range(6)],
        out_specs=vmem_spec(),
        out_shape=jax.ShapeDtypeStruct((B, 4 * H), jnp.float32),
    )(x_flat, h32, c32, params['wx'], params['wh'], params['b'])

    return out[:, :H], out[:, H:2 * H]


def make_params(key, input_size, hidden_size):
    """Deterministic fused gate parameters (synthetic, not a checkpoint).

    Generates the four nn.Linear-style (D, H) weights / (H,) biases and packs them
    into W_x (input_size, 4H) bf16, W_h (H, 4H) bf16, b (1, 4H) f32,
    gate order: forget, input, _update, out.
    """
    D = input_size + hidden_size
    bound = 1.0 / (D ** 0.5)   # nn.Linear default init scale
    wx_parts, wh_parts, b_parts = [], [], []
    for _ in ('forget', 'input', '_update', 'out'):
        key, kw, kb = jax.random.split(key, 3)
        w = jax.random.uniform(kw, (D, hidden_size), jnp.float32, -bound, bound)
        b = jax.random.uniform(kb, (hidden_size,), jnp.float32, -bound, bound)
        wx_parts.append(w[:input_size])
        wh_parts.append(w[input_size:])
        b_parts.append(b)
    wx = jnp.concatenate(wx_parts, axis=1).astype(jnp.bfloat16)   # (IN, 4H)
    wh = jnp.concatenate(wh_parts, axis=1).astype(jnp.bfloat16)   # (H, 4H)
    b = jnp.concatenate(b_parts)[None, :].astype(jnp.float32)     # (1, 4H)
    return {'wx': wx, 'wh': wh, 'b': b}


def reference_mirror(x, h_prev, c_prev, params):
    """Pure-JAX reference mirroring the kernel math exactly (bf16 matmul, f32 rest)."""
    B = x.shape[0]
    H = h_prev.shape[1]
    x_bf = x.reshape(B, -1).astype(jnp.bfloat16)
    h_bf = h_prev.astype(jnp.bfloat16)
    pre = (jnp.dot(x_bf, params['wx'], preferred_element_type=jnp.float32)
           + jnp.dot(h_bf, params['wh'], preferred_element_type=jnp.float32)
           + params['b'])
    f_t = jax.nn.sigmoid(pre[:, 0:H])
    i_t = jax.nn.sigmoid(pre[:, H:2 * H])
    c_opt = jnp.tanh(pre[:, 2 * H:3 * H])
    o_t = jax.nn.sigmoid(pre[:, 3 * H:4 * H])
    c_t = c_prev * f_t + i_t * c_opt
    h_t = o_t * jnp.tanh(c_t)
    return h_t, c_t


def reference_f32(x, h_prev, c_prev, params):
    """PyTorch-style all-f32 forward with the same (bf16-valued) weights."""
    B = x.shape[0]
    H = h_prev.shape[1]
    xh = jnp.concatenate((x.reshape(B, -1), h_prev), axis=1)
    w = jnp.concatenate((params['wx'].astype(jnp.float32),
                         params['wh'].astype(jnp.float32)), axis=0)
    pre = xh @ w + params['b']
    f_t = jax.nn.sigmoid(pre[:, 0:H])
    i_t = jax.nn.sigmoid(pre[:, H:2 * H])
    c_opt = jnp.tanh(pre[:, 2 * H:3 * H])
    o_t = jax.nn.sigmoid(pre[:, 3 * H:4 * H])
    c_t = c_prev * f_t + i_t * c_opt
    h_t = o_t * jnp.tanh(c_t)
    return h_t, c_t


if __name__ == "__main__":
    key = jax.random.PRNGKey(0)
    kx, kh, kc, kp = jax.random.split(key, 4)

    B, C, Hsp, Wsp = 2, 4, 16, 16        # NCHW input, flattened -> input_size = 1024
    input_size = C * Hsp * Wsp
    hidden_size = 32                      # 4H = 128 = one lane width

    x = jax.random.normal(kx, (B, C, Hsp, Wsp), jnp.float32)
    h_prev = jax.random.normal(kh, (B, hidden_size), jnp.float32)
    c_prev = jax.random.normal(kc, (B, hidden_size), jnp.float32)
    embedding_vec = None                  # ignored in vanilla mode

    params = make_params(kp, input_size, hidden_size)

    h_t, c_t = embedding_lstm_cell(x, h_prev, c_prev, embedding_vec, params)
    jax.block_until_ready((h_t, c_t))

    # Tight check against a reference that mirrors the kernel's numerics.
    h_m, c_m = reference_mirror(x, h_prev, c_prev, params)
    assert jnp.allclose(h_t, h_m, atol=1e-4, rtol=1e-4)
    assert jnp.allclose(c_t, c_m, atol=1e-4, rtol=1e-4)

    # Loose check against the all-f32 (PyTorch-style) forward — bounds bf16 operand error.
    h_f, c_f = reference_f32(x, h_prev, c_prev, params)
    assert jnp.allclose(h_t, h_f, atol=5e-2)
    assert jnp.allclose(c_t, c_f, atol=5e-2)

    print("KERNEL_OK")
</pallas_src>

<mosaic_0001>
module attributes {stable_mosaic.version = 11 : i64} {
  func.func @_lstm_cell_kernel(%arg0: memref<2x1024xf32, #tpu.memory_space<vmem>>, %arg1: memref<2x32xf32, #tpu.memory_space<vmem>>, %arg2: memref<2x32xf32, #tpu.memory_space<vmem>>, %arg3: memref<1024x128xbf16, #tpu.memory_space<vmem>>, %arg4: memref<32x128xbf16, #tpu.memory_space<vmem>>, %arg5: memref<1x128xf32, #tpu.memory_space<vmem>>, %arg6: memref<2x128xf32, #tpu.memory_space<vmem>>) attributes {dimension_semantics = [], scalar_prefetch = 0 : i64, scratch_operands = 0 : i64, tpu.core_type = #tpu.core_type<tc>} {
    %c0 = arith.constant 0 : index
    %c0_0 = arith.constant 0 : index
    %0 = vector.load %arg0[%c0, %c0_0] : memref<2x1024xf32, #tpu.memory_space<vmem>>, vector<2x1024xf32>
    %1 = arith.truncf %0 : vector<2x1024xf32> to vector<2x1024xbf16>
    %c0_1 = arith.constant 0 : index
    %c0_2 = arith.constant 0 : index
    %2 = vector.load %arg1[%c0_1, %c0_2] : memref<2x32xf32, #tpu.memory_space<vmem>>, vector<2x32xf32>
    %3 = arith.truncf %2 : vector<2x32xf32> to vector<2x32xbf16>
    %c0_3 = arith.constant 0 : index
    %c0_4 = arith.constant 0 : index
    %4 = vector.load %arg3[%c0_3, %c0_4] : memref<1024x128xbf16, #tpu.memory_space<vmem>>, vector<1024x128xbf16>
    %cst = arith.constant dense<0.000000e+00> : vector<2x128xf32>
    %5 = tpu.matmul %1, %4, %cst {dimension_numbers = #tpu.dot_dimension_numbers<[1], [0], [0], [1], [0, 0, 1, 1], [], []>} : vector<2x1024xbf16>, vector<1024x128xbf16>, vector<2x128xf32> -> vector<2x128xf32>
    %c0_5 = arith.constant 0 : index
    %c0_6 = arith.constant 0 : index
    %6 = vector.load %arg4[%c0_5, %c0_6] : memref<32x128xbf16, #tpu.memory_space<vmem>>, vector<32x128xbf16>
    %cst_7 = arith.constant dense<0.000000e+00> : vector<2x128xf32>
    %7 = tpu.matmul %3, %6, %cst_7 {dimension_numbers = #tpu.dot_dimension_numbers<[1], [0], [0], [1], [0, 0, 1, 1], [], []>} : vector<2x32xbf16>, vector<32x128xbf16>, vector<2x128xf32> -> vector<2x128xf32>
    %8 = arith.addf %5, %7 : vector<2x128xf32>
    %c0_8 = arith.constant 0 : index
    %c0_9 = arith.constant 0 : index
    %9 = vector.load %arg5[%c0_8, %c0_9] : memref<1x128xf32, #tpu.memory_space<vmem>>, vector<1x128xf32>
    %10 = vector.broadcast %9 : vector<1x128xf32> to vector<2x128xf32>
    %11 = arith.addf %8, %10 : vector<2x128xf32>
    %12 = tpu.iota {dimensions = array<i32: 1>} : vector<2x128xi32>
    %c64_i32 = arith.constant 64 : i32
    %13 = vector.broadcast %c64_i32 : i32 to vector<2x128xi32>
    %14 = arith.cmpi sge, %12, %13 : vector<2x128xi32>
    %c96_i32 = arith.constant 96 : i32
    %15 = vector.broadcast %c96_i32 : i32 to vector<2x128xi32>
    %16 = arith.cmpi slt, %12, %15 : vector<2x128xi32>
    %17 = arith.andi %14, %16 : vector<2x128xi1>
    %18 = math.tanh %11 : vector<2x128xf32>
    %19 = arith.negf %11 : vector<2x128xf32>
    %20 = math.exp %19 : vector<2x128xf32>
    %cst_10 = arith.constant 1.000000e+00 : f32
    %21 = vector.broadcast %cst_10 : f32 to vector<2x128xf32>
    %22 = arith.addf %21, %20 : vector<2x128xf32>
    %23 = arith.divf %21, %22 : vector<2x128xf32>
    %24 = arith.select %17, %18, %23 : vector<2x128xi1>, vector<2x128xf32>
    %25 = vector.extract_strided_slice %24 {offsets = [0, 0], sizes = [2, 32], strides = [1, 1]} : vector<2x128xf32> to vector<2x32xf32>
    %26 = vector.extract_strided_slice %24 {offsets = [0, 32], sizes = [2, 32], strides = [1, 1]} : vector<2x128xf32> to vector<2x32xf32>
    %27 = vector.extract_strided_slice %24 {offsets = [0, 64], sizes = [2, 32], strides = [1, 1]} : vector<2x128xf32> to vector<2x32xf32>
    %28 = vector.extract_strided_slice %24 {offsets = [0, 96], sizes = [2, 32], strides = [1, 1]} : vector<2x128xf32> to vector<2x32xf32>
    %c0_11 = arith.constant 0 : index
    %c0_12 = arith.constant 0 : index
    %29 = vector.load %arg2[%c0_11, %c0_12] : memref<2x32xf32, #tpu.memory_space<vmem>>, vector<2x32xf32>
    %30 = arith.mulf %29, %25 : vector<2x32xf32>
    %31 = arith.mulf %26, %27 : vector<2x32xf32>
    %32 = arith.addf %30, %31 : vector<2x32xf32>
    %33 = math.tanh %32 : vector<2x32xf32>
    %34 = arith.mulf %28, %33 : vector<2x32xf32>
    %cst_13 = arith.constant 0.000000e+00 : f32
    %35 = vector.broadcast %cst_13 : f32 to vector<2x64xf32>
    %36 = tpu.concatenate %34, %32, %35 in 1 : vector<2x32xf32>, vector<2x32xf32>, vector<2x64xf32> -> vector<2x128xf32>
    %c0_14 = arith.constant 0 : index
    %c0_15 = arith.constant 0 : index
    %37 = vector.load %arg6[%c0_14, %c0_15] : memref<2x128xf32, #tpu.memory_space<vmem>>, vector<2x128xf32>
    tpu.vector_store %arg6[%c0_14, %c0_15], %36 {strides = array<i32>} : memref<2x128xf32, #tpu.memory_space<vmem>>, vector<2x128xf32>,
    return
  }
}

</mosaic_0001>

<bundles_post_ra>
// kernel: tpu_custom_call.1
= control target key start
LH: loop header
LB: loop body
LE: loop exit
PB: predicated region body
PF: predicated region fallthrough
CT: control target
= control target key end

     0   :  { %11 = vsyncpa [#allocation3], 0  ;;  %s1387_s0 = inlined_call_operand.hbm [shape: f32[2,1024], index: 0, kind: input, shape index: {}]   ;;  %s1388_s1 = inlined_call_operand.vmem [shape: f32[2,32], index: 1, kind: input, shape index: {}]   ;;  %s1389_s2 = inlined_call_operand.vmem [shape: f32[2,32], index: 2, kind: input, shape index: {}]   ;;  %s1390_s3 = inlined_call_operand.hbm [shape: bf16[1024,128], index: 3, kind: input, shape index: {}]   ;;  %s1391_s4 = inlined_call_operand.hbm [shape: bf16[32,128], index: 4, kind: input, shape index: {}]   ;;  %s1392_s5 = inlined_call_operand.vmem [shape: f32[1,128], index: 5, kind: input, shape index: {}]   ;;  %s1393_s6 = inlined_call_operand.hbm [shape: f32[2,128], index: 6, kind: output, shape index: {}]  }
   0x1   :  { %12 = vsyncpa [#allocation6], 0 }
   0x2   :  { %13 = vsyncpa [#allocation4], 0  ;;  %s1268_s21 = smov [#allocation5]   ;;  %s1174_s25 = scalar_lea.hbm %s1390_s3, 8192 }
   0x3   :  { %s33_s22 = sshll.u32 %s1268_s21, 4  ;;  %p1175_p0 = scmp.ne.s32.totalorder %s1390_s3, %s1174_s25  ;;  %s34_s22 = int_to_ptr.vmem [resolvable:$true] %s33_s22 }
   0x4   :  { %p1178_p1 = scmp.lt.u32.totalorder %s1174_s25, %s1390_s3 }
   0x6   :  { %p1180_p2 = pnand %p1178_p1, %p1175_p0 }
   0x8   :  { %1183 = shalt.err (!%p1180_p2)
}
   0x9   :  { %s1184_s30 = scalar_lea.vmem %s34_s22, 8192  ;;  %p1189_p4 = scmp.lt.s32.totalorder %s34_s22, %s34_s22 }
   0xa   :  { %p1185_p3 = scmp.ne.s32.totalorder %s34_s22, %s1184_s30  ;;  %p1190_p5 = scmp.lt.s32.totalorder %s1184_s30, %s1184_s30 }
   0xc   :  { %p1191_p6 = por %p1190_p5, %p1189_p4 }
   0xe   :  { %p1192_p7 = pnand %p1191_p6, %p1185_p3 }
  0x10   :  { %1195 = shalt.err (!%p1192_p7)
}
  0x11   :  { %s1269_s7 = smov 64   ;;  %s1270_s8 = smov 4  }
  0x12   :  { %39 = dma.hbm_to_vmem [thread:$0]  %s1390_s3, 8192, %s34_s22, [#allocation6], %s1269_s7, %s1269_s7, %s1270_s8  }
  0x13   :  { %s1271_s11 = smov [#allocation2]   ;;  %s1272_s13 = smov [#allocation7]  }
  0x14   :  { %s20_s12 = sshll.u32 %s1271_s11, 4  ;;  %s45_s14 = sshll.u32 %s1272_s13, 4  ;;  %s21_s12 = int_to_ptr.vmem [resolvable:$true] %s20_s12  ;;  %s46_s14 = int_to_ptr.vmem [resolvable:$true] %s45_s14 }
  0x15   :  { %s1196_s17 = scalar_lea.hbm %s1387_s0, 256 }
  0x16   :  { %p1197_p8 = scmp.ne.s32.totalorder %s1387_s0, %s1196_s17  ;;  %p1200_p9 = scmp.lt.u32.totalorder %s1196_s17, %s1387_s0 }
  0x18   :  { %p1202_p10 = pnand %p1200_p9, %p1197_p8 }
  0x1a   :  { %1205 = shalt.err (!%p1202_p10)
}
  0x1b   :  { %s1206_s3 = scalar_lea.vmem %s21_s12, 256  ;;  %p1211_p12 = scmp.lt.s32.totalorder %s21_s12, %s21_s12 }
  0x1c   :  { %p1207_p11 = scmp.ne.s32.totalorder %s21_s12, %s1206_s3  ;;  %p1212_p13 = scmp.lt.s32.totalorder %s1206_s3, %s1206_s3 }
  0x1e   :  { %p1213_p0 = por %p1212_p13, %p1211_p12 }
  0x20   :  { %p1214_p1 = pnand %p1213_p0, %p1207_p11 }
  0x22   :  { %1217 = shalt.err (!%p1214_p1)
}
  0x23   :  { %23 = dma.hbm_to_vmem [thread:$0]  %s1387_s0, 256, %s21_s12, [#allocation3]  }
  0x24   :  { %s1218_s26 = scalar_lea.hbm %s1391_s4, 256 }
  0x25   :  { %p1219_p2 = scmp.ne.s32.totalorder %s1391_s4, %s1218_s26  ;;  %p1222_p3 = scmp.lt.u32.totalorder %s1218_s26, %s1391_s4 }
  0x27   :  { %p1224_p4 = pnand %p1222_p3, %p1219_p2 }
  0x29   :  { %1227 = shalt.err (!%p1224_p4)
}
  0x2a   :  { %s1228_s9 = scalar_lea.vmem %s46_s14, 256  ;;  %p1233_p6 = scmp.lt.s32.totalorder %s46_s14, %s46_s14 }
  0x2b   :  { %p1229_p5 = scmp.ne.s32.totalorder %s46_s14, %s1228_s9  ;;  %p1234_p7 = scmp.lt.s32.totalorder %s1228_s9, %s1228_s9 }
  0x2d   :  { %p1235_p8 = por %p1234_p7, %p1233_p6 }
  0x2f   :  { %p1236_p9 = pnand %p1235_p8, %p1229_p5 }
  0x31   :  { %1239 = shalt.err (!%p1236_p9)
}
  0x32   :  { %51 = dma.hbm_to_vmem [thread:$0]  %s1391_s4, 256, %s46_s14, [#allocation6], %s1269_s7, %s1269_s7, %s1270_s8  }
  0x33   :  { %1262 = dma.done.wait [#allocation3], 256  }
  0x34   :  { %1263 = vsyncadd [#allocation3], 4294967040 }
  0x35   :  { %1264 = dma.done.wait [#allocation6], 8448  }
  0x36   :  { %1265 = vsyncadd [#allocation6], 4294958848  ;;  %v1273_v0 = vmov 0.0   ;;  %vm1274_vm0 = vmmov 0   ;;  %v1098_v1 = vld [vmem:[#allocation7] sm:$0xff]   ;;  %v1101_v4 = vld [vmem:[#allocation7 + $0x8] sm:$0xff]   ;;  %v72_v24 = vlaneseq }
  0x37   :  { %1079 = vmatprep.subr.bf16.mxu0 %v1273_v0  ;;  %1083 = vmatprep.mubr.msk.bf16.mxu0 %vm1274_vm0, %v1273_v0  ;;  %v1099_v2 = vld [vmem:[#allocation5 + $0x40] sm:$0xff]   ;;  %v1102_v5 = vld [vmem:[#allocation5 + $0x48] sm:$0xff]   ;;  %vm264_vm1 = vcmask 261120   ;;  %v118_v7 = vld [vmem:[%s1388_s1] sm:$0x3]  ;;  %s1276_s11 = smov 96  }
  0x38   :  { %1080 = vmatpush3.bf16.msra.mxu0 %v1098_v1  ;;  %v1100_v3 = vld [vmem:[#allocation5] sm:$0xff]   ;;  %991 = vmatprep.subr.bf16.mxu1 %v1099_v2  ;;  %v1103_v6 = vld [vmem:[#allocation5 + $0x8] sm:$0xff]   ;;  %v119_v8 = vpack.c.bf16 %v118_v7, %v118_v7  ;;  %v1105_v10 = vld [vmem:[#allocation5 + $0x50] sm:$0xff]   ;;  %v1275_v22 = vmov 1983009808   ;;  %v73_v30 = vshrl.u32 %v72_v24, 7 }
  0x39   :  { %1081 = vmatprep.subr.bf16.mxu0 %v1273_v0  ;;  %992 = vmatpush3.bf16.msra.mxu1 %v1100_v3  ;;  %v1104_v9 = vld [vmem:[#allocation5 + $0xc0] sm:$0xff]   ;;  %v1107_v12 = vld [vmem:[#allocation5 + $0x10] sm:$0xff]   ;;  %v1108_v13 = vld [vmem:[#allocation5 + $0xc8] sm:$0xff]   ;;  %v70_v23 = vunpack.c.l.s4 %v1275_v22  ;;  %s1277_s13 = smov 32   ;;  %s1278_s14 = smov [#allocation8]   ;;  %vm900_vm5 = vcmask 523264  }
  0x3a   :  { %993 = vmatprep.subr.bf16.mxu1 %v1102_v5  ;;  %v1106_v11 = vld [vmem:[#allocation5 + $0x80] sm:$0xff]   ;;  %v1109_v14 = vld [vmem:[#allocation5 + $0x58] sm:$0xff]   ;;  %v1110_v15 = vld [vmem:[#allocation5 + $0x88] sm:$0xff]   ;;  %s909_s15 = sshll.u32 %s1278_s14, 4  ;;  %s910_s15 = int_to_ptr.vmem [resolvable:$true] %s909_s15 }
  0x3b   :  { %v1111_v16 = vld [vmem:[#allocation5 + $0x18] sm:$0xff]   ;;  %v1112_v17 = vld [vmem:[#allocation5 + $0xd0] sm:$0xff]   ;;  %v1113_v18 = vld [vmem:[#allocation5 + $0x60] sm:$0xff]   ;;  %v71_v29 = vunpack.c.0.s8 %v70_v23  ;;  %p1245_p11 = scmp.lt.s32.totalorder %s910_s15, %s910_s15 }
  0x3c   :  { %1082 = vmatpush3.bf16.msra.mxu0 %v1101_v4  ;;  %v1114_v19 = vld [vmem:[#allocation5 + $0x90] sm:$0xff]   ;;  %v1115_v20 = vld [vmem:[#allocation5 + $0x20] sm:$0xff]   ;;  %v1116_v21 = vld [vmem:[#allocation5 + $0xd8] sm:$0xff]  }
  0x3d   :  { %994 = vmatpush3.bf16.msra.mxu1 %v1103_v6  ;;  %1013 = vmatprep.subr.bf16.mxu0 %v1104_v9  ;;  %v1117_v25 = vld [vmem:[#allocation5 + $0x68] sm:$0xff]   ;;  %v1118_v26 = vld [vmem:[#allocation5 + $0x98] sm:$0xff]   ;;  %v1120_v28 = vld [vmem:[#allocation5 + $0xe0] sm:$0xff]   ;;  %v1361_v35 = vsub.s32 %v71_v29, %v73_v30 }
  0x3e   :  { %995 = vmatprep.subr.bf16.mxu1 %v1105_v10  ;;  %v1119_v27 = vld [vmem:[#allocation5 + $0x28] sm:$0xff]   ;;  %v1121_v31 = vld [vmem:[#allocation5 + $0x70] sm:$0xff]   ;;  %v1122_v32 = vld [vmem:[#allocation5 + $0xa0] sm:$0xff]  }
  0x3f   :  { %1084 = vmatmul.mubr.msk.bf16.vlgmr.msra.gmra.mrb[0].mxu0 %vm264_vm1, %v119_v8  ;;  %v1123_v33 = vld [vmem:[#allocation5 + $0x30] sm:$0xff]   ;;  %v1124_v34 = vld [vmem:[#allocation5 + $0xe8] sm:$0xff]   ;;  %v1125_v36 = vld [vmem:[#allocation5 + $0x78] sm:$0xff]  }
  0x40   :  { %1014 = vmatpush3.bf16.msra.mxu0 %v1106_v11  ;;  %v1126_v37 = vld [vmem:[#allocation5 + $0xa8] sm:$0xff]   ;;  %v1127_v38 = vld [vmem:[#allocation5 + $0x38] sm:$0xff]   ;;  %v64_v39 = vld [vmem:[#allocation2] sm:$0xff] }
  0x41   :  { %996 = vmatpush3.bf16.msra.mxu1 %v1107_v12  ;;  %1015 = vmatprep.subr.bf16.mxu0 %v1108_v13  ;;  %v68_v40 = vcombine.high %v64_v39, %v64_v39  ;;  %v75_v41 = vrot.slane %v64_v39, %v1361_v35  ;;  %v1129_v42 = vld [vmem:[#allocation5 + $0xf0] sm:$0xff]   ;;  %v1131_v45 = vld [vmem:[#allocation5 + $0x140] sm:$0xff]   ;;  %v1133_v50 = vld [vmem:[#allocation5 + $0xf8] sm:$0xff]  }
  0x42   :  { %997 = vmatprep.subr.bf16.mxu1 %v1109_v14  ;;  %v1130_v43 = vld [vmem:[#allocation5 + $0xb0] sm:$0xff]   ;;  %v1132_v48 = vld [vmem:[#allocation5 + $0x100] sm:$0xff]   ;;  %v1134_v52 = vld [vmem:[#allocation5 + $0xb8] sm:$0xff]  }
  0x43   :  { %v83_v44 = vcombine.high %v75_v41, %v75_v41  ;;  %v82_v46 = vrot.slane %v68_v40, %v1361_v35  ;;  %v110_v47 = vpack.c.bf16 %v75_v41, %v75_v41  ;;  %v1135_v53 = vld [vmem:[#allocation5 + $0x148] sm:$0xff]   ;;  %v1137_v57 = vld [vmem:[#allocation5 + $0x1c0] sm:$0xff]   ;;  %v1138_v58 = vld [vmem:[#allocation5 + $0x150] sm:$0xff]  }
  0x44   :  { %1016 = vmatpush3.bf16.msra.mxu0 %v1110_v15  ;;  %v1136_v55 = vld [vmem:[#allocation5 + $0x108] sm:$0xff]   ;;  %v1139_v59 = vld [vmem:[#allocation5 + $0x180] sm:$0xff]   ;;  %v1140_v60 = vld [vmem:[#allocation5 + $0x110] sm:$0xff]  }
  0x45   :  { %998 = vmatpush3.bf16.msra.mxu1 %v1111_v16  ;;  %1017 = vmatprep.subr.bf16.mxu0 %v1112_v17  ;;  %v111_v49 = vpack.c.bf16 %v83_v44, %v83_v44  ;;  %v84_v51 = vcombine.high %v82_v46, %v82_v46  ;;  %v112_v56 = vpack.c.bf16 %v82_v46, %v82_v46  ;;  %v1141_v61 = vld [vmem:[#allocation5 + $0x1c8] sm:$0xff]   ;;  %v1142_v62 = vld [vmem:[#allocation5 + $0x158] sm:$0xff]   ;;  %v1145_v1 = vld [vmem:[#allocation5 + $0x1d0] sm:$0xff]  }
  0x46   :  { %999 = vmatprep.subr.bf16.mxu1 %v1113_v18  ;;  %v1143_v63 = vld [vmem:[#allocation5 + $0x188] sm:$0xff]   ;;  %v1144_v0 = vld [vmem:[#allocation5 + $0x118] sm:$0xff]   ;;  %v1146_v2 = vld [vmem:[#allocation5 + $0x160] sm:$0xff]  }
  0x47   :  { %724 = vmatprep.mubr.bf16.mxu1 %v111_v49  ;;  %v113_v54 = vpack.c.bf16 %v84_v51, %v84_v51  ;;  %v1147_v3 = vld [vmem:[#allocation5 + $0x190] sm:$0xff]   ;;  %v1148_v4 = vld [vmem:[#allocation5 + $0x120] sm:$0xff]   ;;  %v1149_v5 = vld [vmem:[#allocation5 + $0x1d8] sm:$0xff]  }
  0x48   :  { %1018 = vmatpush3.bf16.msra.mxu0 %v1114_v19  ;;  %v1150_v6 = vld [vmem:[#allocation5 + $0x168] sm:$0xff]   ;;  %v1151_v7 = vld [vmem:[#allocation5 + $0x198] sm:$0xff]   ;;  %v1153_v9 = vld [vmem:[#allocation5 + $0x1e0] sm:$0xff]  }
  0x49   :  { %1000 = vmatpush3.bf16.msra.mxu1 %v1115_v20  ;;  %1019 = vmatprep.subr.bf16.mxu0 %v1116_v21  ;;  %v1152_v8 = vld [vmem:[#allocation5 + $0x128] sm:$0xff]   ;;  %v1154_v10 = vld [vmem:[#allocation5 + $0x170] sm:$0xff]   ;;  %v1155_v11 = vld [vmem:[#allocation5 + $0x1a0] sm:$0xff]  }
  0x4a   :  { %1001 = vmatprep.subr.bf16.mxu1 %v1117_v25  ;;  %764 = vmatprep.mubr.bf16.mxu0 %v113_v54  ;;  %v1156_v12 = vld [vmem:[#allocation5 + $0x130] sm:$0xff]   ;;  %v1157_v13 = vld [vmem:[#allocation5 + $0x1e8] sm:$0xff]   ;;  %v1158_v14 = vld [vmem:[#allocation5 + $0x178] sm:$0xff]  }
  0x4b   :  { %v1159_v15 = vld [vmem:[#allocation5 + $0x1a8] sm:$0xff]   ;;  %v1160_v16 = vld [vmem:[#allocation5 + $0x138] sm:$0xff]   ;;  %v1161_v19 = vld [vmem:[#allocation5 + $0x1f0] sm:$0xff]  }
  0x4c   :  { %1020 = vmatpush3.bf16.msra.mxu0 %v1118_v26  ;;  %v65_v17 = vld [vmem:[#allocation2 + $0x8] sm:$0xff]  ;;  %v1162_v21 = vld [vmem:[#allocation5 + $0x1b0] sm:$0xff]  }
  0x4d   :  { %1002 = vmatpush3.bf16.msra.mxu1 %v1119_v27  ;;  %1021 = vmatprep.subr.bf16.mxu0 %v1120_v28  ;;  %v92_v18 = vrot.slane %v65_v17, %v1361_v35  ;;  %v85_v20 = vcombine.high %v65_v17, %v65_v17  ;;  %v1163_v23 = vld [vmem:[#allocation5 + $0x1f8] sm:$0xff]  }
  0x4e   :  { %1003 = vmatprep.subr.bf16.mxu1 %v1121_v31  ;;  %v1164_v28 = vld [vmem:[#allocation5 + $0x1b8] sm:$0xff]  }
  0x4f   :  { %v100_v22 = vcombine.high %v92_v18, %v92_v18  ;;  %v99_v25 = vrot.slane %v85_v20, %v1361_v35  ;;  %v114_v26 = vpack.c.bf16 %v92_v18, %v92_v18 }
  0x50   :  { %1022 = vmatpush3.bf16.msra.mxu0 %v1122_v32 }
  0x51   :  { %1004 = vmatpush3.bf16.msra.mxu1 %v1123_v33  ;;  %1023 = vmatprep.subr.bf16.mxu0 %v1124_v34  ;;  %v115_v27 = vpack.c.bf16 %v100_v22, %v100_v22  ;;  %v101_v29 = vcombine.high %v99_v25, %v99_v25  ;;  %v116_v31 = vpack.c.bf16 %v99_v25, %v99_v25 }
  0x52   :  { %1005 = vmatprep.subr.bf16.mxu1 %v1125_v36 }
  0x53   :  { %v117_v30 = vpack.c.bf16 %v101_v29, %v101_v29 }
  0x54   :  { %1024 = vmatpush3.bf16.msra.mxu0 %v1126_v37 }
  0x55   :  { %1006 = vmatpush3.bf16.msra.mxu1 %v1127_v38  ;;  %1025 = vmatprep.subr.bf16.mxu0 %v1129_v42 }
  0x56   :  { %1035 = vmatprep.subr.bf16.mxu1 %v1131_v45 }
  0x58   :  { %1026 = vmatpush3.bf16.msra.mxu0 %v1130_v43  ;;  %725 = vmatmul.mubr.bf16.vlgmr.msra.gmra.mrb[0].mxu1 %v110_v47 }
  0x59   :  { %1027 = vmatprep.subr.bf16.mxu0 %v1133_v50  ;;  %1036 = vmatpush3.bf16.msra.mxu1 %v1132_v48 }
  0x5a   :  { %1037 = vmatprep.subr.bf16.mxu1 %v1135_v53  ;;  %804 = vmatprep.mubr.bf16.mxu1 %v115_v27 }
  0x5c   :  { %1028 = vmatpush3.bf16.msra.mxu0 %v1134_v52 }
  0x5d   :  { %1057 = vmatprep.subr.bf16.mxu0 %v1137_v57  ;;  %1038 = vmatpush3.bf16.msra.mxu1 %v1136_v55 }
  0x5e   :  { %1039 = vmatprep.subr.bf16.mxu1 %v1138_v58  ;;  %v986_v58 = vld [vmem:[%s1392_s5] ss:$0 sm:$0xff] }
  0x5f   :  { %765 = vmatmul.mubr.bf16.vlgmr.msra.gmra.mrb[4].mxu0 %v112_v56 }
  0x60   :  { %1058 = vmatpush3.bf16.msra.mxu0 %v1139_v59  ;;  %844 = vmatprep.mubr.bf16.mxu0 %v117_v30 }
  0x61   :  { %1059 = vmatprep.subr.bf16.mxu0 %v1141_v61  ;;  %1040 = vmatpush3.bf16.msra.mxu1 %v1140_v60 }
  0x62   :  { %1041 = vmatprep.subr.bf16.mxu1 %v1142_v62 }
  0x64   :  { %1060 = vmatpush3.bf16.msra.mxu0 %v1143_v63 }
  0x65   :  { %1061 = vmatprep.subr.bf16.mxu0 %v1145_v1  ;;  %1042 = vmatpush3.bf16.msra.mxu1 %v1144_v0  ;;  %v861_v1 = vand.u32 127, %v72_v24 }
  0x66   :  { %1043 = vmatprep.subr.bf16.mxu1 %v1146_v2 }
  0x67   :  { %vm862_vm2 = vcmp.ge.s32.totalorder %v861_v1, 64  ;;  %vm863_vm3 = vcmp.lt.s32.totalorder %v861_v1, 96 }
  0x68   :  { %1062 = vmatpush3.bf16.msra.mxu0 %v1147_v3  ;;  %vm864_vm4 = vmand %vm862_vm2, %vm863_vm3 }
  0x69   :  { %1063 = vmatprep.subr.bf16.mxu0 %v1149_v5  ;;  %1044 = vmatpush3.bf16.msra.mxu1 %v1148_v4 }
  0x6a   :  { %1045 = vmatprep.subr.bf16.mxu1 %v1150_v6 }
  0x6c   :  { %1064 = vmatpush3.bf16.msra.mxu0 %v1151_v7  ;;  %v873_v7 = vld [vmem:[%s1389_s2] sm:$0x3]  ;;  %s1240_s2 = scalar_lea.vmem %s910_s15, 32 }
  0x6d   :  { %1065 = vmatprep.subr.bf16.mxu0 %v1153_v9  ;;  %1046 = vmatpush3.bf16.msra.mxu1 %v1152_v8  ;;  %p1241_p10 = scmp.ne.s32.totalorder %s910_s15, %s1240_s2  ;;  %p1246_p12 = scmp.lt.s32.totalorder %s1240_s2, %s1240_s2 }
  0x6e   :  { %1047 = vmatprep.subr.bf16.mxu1 %v1154_v10 }
  0x6f   :  { %p1247_p13 = por %p1246_p12, %p1245_p11 }
  0x70   :  { %1066 = vmatpush3.bf16.msra.mxu0 %v1155_v11 }
  0x71   :  { %1067 = vmatprep.subr.bf16.mxu0 %v1157_v13  ;;  %1048 = vmatpush3.bf16.msra.mxu1 %v1156_v12  ;;  %p1248_p0 = pnand %p1247_p13, %p1241_p10 }
  0x72   :  { %1049 = vmatprep.subr.bf16.mxu1 %v1158_v14 }
  0x74   :  { %1068 = vmatpush3.bf16.msra.mxu0 %v1159_v15 }
  0x75   :  { %1069 = vmatprep.subr.bf16.mxu0 %v1161_v19  ;;  %1050 = vmatpush3.bf16.msra.mxu1 %v1160_v16 }
  0x78   :  { %1070 = vmatpush3.bf16.msra.mxu0 %v1162_v21  ;;  %805 = vmatmul.mubr.bf16.vlgmr.msra.gmra.mrb[4].mxu1 %v114_v26 }
  0x79   :  { %1071 = vmatprep.subr.bf16.mxu0 %v1163_v23 }
  0x7c   :  { %1072 = vmatpush3.bf16.msra.mxu0 %v1164_v28 }
  0x7f   :  { %845 = vmatmul.mubr.bf16.vlgmr.msra.gmra.mrb[8].mxu0 %v116_v31 }
 0x112   :  { %v302_v32 = vpop.f32.mrb[0].mxu0 }
 0x113   :  { %v1085_v33 = vpop.f32.mrb[1].mxu0 }
 0x114   :  { %v305_v34 = vpop.f32.mrb[2].mxu0 }
 0x115   :  { %v1086_v36 = vpop.f32.mrb[3].mxu0 }
 0x12b   :  { %v1007_v37 = vpop.f32.mrb[0].mxu1 }
 0x12c   :  { %v1008_v35 = vpop.f32.mrb[1].mxu1 }
 0x12d   :  { %v1009_v38 = vadd.f32 %v1008_v35, %v1007_v37  ;;  %v1010_v39 = vpop.f32.mrb[2].mxu1 }
 0x12e   :  { %v1011_v40 = vpop.f32.mrb[3].mxu1 }
 0x12f   :  { %v727_v41 = vadd.f32 %v1009_v38, %v302_v32 }
 0x132   :  { %v1029_v42 = vpop.f32.mrb[4].mxu0 }
 0x133   :  { %v1030_v43 = vpop.f32.mrb[5].mxu0 }
 0x134   :  { %v1031_v44 = vadd.f32 %v1030_v43, %v1029_v42  ;;  %v1032_v45 = vpop.f32.mrb[6].mxu0 }
 0x135   :  { %v1033_v46 = vpop.f32.mrb[7].mxu0 }
 0x136   :  { %v767_v47 = vadd.f32 %v1031_v44, %v727_v41 }
 0x14b   :  { %v1051_v48 = vpop.f32.mrb[4].mxu1 }
 0x14c   :  { %v1052_v49 = vpop.f32.mrb[5].mxu1 }
 0x14d   :  { %v1053_v50 = vadd.f32 %v1052_v49, %v1051_v48  ;;  %v1054_v51 = vpop.f32.mrb[6].mxu1 }
 0x14e   :  { %v1055_v52 = vpop.f32.mrb[7].mxu1 }
 0x14f   :  { %v807_v53 = vadd.f32 %v1053_v50, %v767_v47 }
 0x152   :  { %v1073_v54 = vpop.f32.mrb[8].mxu0 }
 0x153   :  { %v1074_v55 = vpop.f32.mrb[9].mxu0 }
 0x154   :  { %v1075_v56 = vadd.f32 %v1074_v55, %v1073_v54  ;;  %v1076_v57 = vpop.f32.mrb[10].mxu0 }
 0x155   :  { %v1077_v59 = vpop.f32.mrb[11].mxu0 }
 0x156   :  { %v847_v60 = vadd.f32 %v1075_v56, %v807_v53 }
 0x158   :  { %v859_v61 = vadd.f32 %v986_v58, %v847_v60 }
 0x15a   :  { %v987_v62 = vmul.f32 -1.442695, %v859_v61 }
 0x15c   :  { %1166 = vpow2.f32 %v987_v62 }
 0x15d   :  { %1168 = vtanh.f32 %v859_v61 }
 0x166   :  { %v1167_v63 = vpop.eup %1166 }
 0x167   :  { %v869_v0 = vadd.f32 1.0, %v1167_v63  ;;  %v1169_v2 = vpop.eup %1168 }
 0x169   :  { %1170 = vrcp.f32 %v869_v0 }
 0x173   :  { %v1171_v3 = vpop.eup %1170 }
 0x174   :  { %v872_v4 = vsel %vm864_vm4, %v1169_v2, %v1171_v3 }
 0x175   :  { %876 = vrot.lane.b32.xlu0 %v872_v4, %s1276_s11  ;;  %v874_v8 = vmul.f32 %v873_v7, %v872_v4 }
 0x1e7   :  { %v877_v5 = vpop.permute.xlu0 %876 }
 0x1e8   :  { %v879_v6 = vmul.f32 %v877_v5, %v872_v4 }
 0x1ea   :  { %881 = vrot.lane.b32.xlu0 %v879_v6, %s1276_s11 }
 0x25c   :  { %v882_v9 = vpop.permute.xlu0 %881 }
 0x25d   :  { %v884_v10 = vadd.f32 %v882_v9, %v874_v8 }
 0x25f   :  { %1172 = vtanh.f32 %v884_v10  ;;  %896 = vrot.lane.b32.xlu0 %v884_v10, %s1277_s13 }
 0x269   :  { %v1173_v24 = vpop.eup %1172 }
 0x26a   :  { %887 = vrot.lane.b32.xlu1 %v1173_v24, %s1276_s11 }
 0x2d1   :  { %v897_v13 = vpop.permute.xlu0 %896 }
 0x2dc   :  { %v888_v11 = vpop.permute.xlu1 %887 }
 0x2dd   :  { %v890_v12 = vmul.f32 %v888_v11, %v872_v4 }
 0x2df   :  { %892 = vrot.lane.b32.xlu1 %v890_v12, %s1277_s13 }
 0x351   :  { %v893_v14 = vpop.permute.xlu1 %892 }
 0x352   :  { %v899_v15 = vsel %vm264_vm1, %v893_v14, %v897_v13 }
 0x353   :  { %v901_v16 = vsel %vm900_vm5, %v899_v15, 0.0 }
 0x354   :  { %902 = vst [vmem:[#allocation8] sm:$0x3] %v901_v16 }
 0x355   :  { %1251 = shalt.err (!%p1248_p0)
}
 0x356   :  { %s1252_s18 = scalar_lea.hbm %s1393_s6, 32 }
 0x357   :  { %p1253_p1 = scmp.ne.s32.totalorder %s1393_s6, %s1252_s18  ;;  %p1256_p2 = scmp.lt.u32.totalorder %s1252_s18, %s1393_s6 }
 0x359   :  { %p1258_p3 = pnand %p1256_p2, %p1253_p1 }
 0x35b   :  { %1261 = shalt.err (!%p1258_p3)
}
 0x35c   :  { %912 = dma.vmem_to_hbm [thread:$0]  %s910_s15, 32, %s1393_s6, [#allocation4]  }
 0x35d   :  { %1266 = dma.done.wait [#allocation4], 32  }
 0x35e   :  { %1267 = vsyncadd [#allocation4], 4294967264 }
 0x35f   :  { %916 = vsyncpa [#allocation3], 1 }
 0x360   :  { %917 = vsyncpa [#allocation6], 1 }
 0x361   :  { %918 = vsyncpa [#allocation4], 1 }

</bundles_post_ra>
